<compile_context>
chip_gen: v7x
topology: tpu7x:2x2x1
jax: 0.10.0
libtpu: 0.0.40
codegen_flags: <defaults>
</compile_context>

<pallas_src>
import jax
import jax.numpy as jnp
from jax.experimental import pallas as pl
from jax.experimental.pallas import tpu as pltpu


def mce_ff_kernel(x_ref, w1_ref, b1_ref, w2_ref, b2_ref, o_ref):
    """Fused 2 -> k -> 2 MLP on one batch tile.

    x_ref : (2, tile_n)   features on sublanes, batch on lanes
    w1_ref: (k, 2)        hidden weight, PyTorch (out, in) layout
    b1_ref: (k, 1)        hidden bias
    w2_ref: (2, k)        output weight, PyTorch (out, in) layout
    b2_ref: (2, 1)        output bias
    o_ref : (2, tile_n)
    """
    x = x_ref[...]

    # Layer 1 on the MXU: (k,2) @ (2,tile_n) -> (k,tile_n); sigmoid on the EUP.
    h = jax.nn.sigmoid(
        jnp.dot(w1_ref[...], x, preferred_element_type=jnp.float32) + b1_ref[...]
    )

    # Layer 2 on the MXU: (2,k) @ (k,tile_n) -> (2,tile_n); bias broadcast on lanes.
    o_ref[...] = (
        jnp.dot(w2_ref[...], h, preferred_element_type=jnp.float32) + b2_ref[...]
    ).astype(o_ref.dtype)


def mce_ff_forward_tn(x_t, w1, b1, w2, b2, *, tile_n=16384):
    """Feature-major forward: x_t (2, N) -> (2, N) f32 (no relayout passes)."""
    in_f, N = x_t.shape
    assert in_f == 2
    k = w1.shape[0]
    out_f = w2.shape[0]

    # Lane-aligned batch tiling.
    n128 = pl.cdiv(N, 128) * 128
    # Keep >= 2 grid steps when the batch is big enough so the 'parallel' axis
    # can be sharded across both TensorCores on v7x (no-op on v5e/v6e).
    if n128 >= 256:
        tile_n = min(tile_n, (n128 // 2 // 128) * 128)
    tile_n = max(128, min(tile_n, n128))
    n_pad = pl.cdiv(N, tile_n) * tile_n

    if n_pad != N:
        # Zero-padded tail columns compute harmless values and are sliced off.
        x_t = jnp.pad(x_t, ((0, 0), (0, n_pad - N)))

    cost = pl.CostEstimate(
        flops=8 * k * n_pad,                 # 2*(2k) + 2*(2k) MAC-flops per sample
        transcendentals=k * n_pad,           # one sigmoid per hidden element
        bytes_accessed=2 * in_f * n_pad * 4  # x in + out
        + (k * in_f + k + out_f * k + out_f) * 4,
    )

    out_t = pl.pallas_call(
        mce_ff_kernel,
        out_shape=jax.ShapeDtypeStruct((out_f, n_pad), jnp.float32),
        grid_spec=pltpu.PrefetchScalarGridSpec(
            num_scalar_prefetch=0,
            grid=(n_pad // tile_n,),
            in_specs=[
                pl.BlockSpec((in_f, tile_n), lambda i: (0, i)),   # x tile (lane-dense)
                pl.BlockSpec((k, in_f), lambda i: (0, 0)),        # W1 (whole)
                pl.BlockSpec((k, 1), lambda i: (0, 0)),           # b1 (whole)
                pl.BlockSpec((out_f, k), lambda i: (0, 0)),       # W2 (whole, (2,k))
                pl.BlockSpec((out_f, 1), lambda i: (0, 0)),       # b2 (whole)
            ],
            out_specs=pl.BlockSpec((out_f, tile_n), lambda i: (0, i)),
        ),
        compiler_params=pltpu.CompilerParams(
            dimension_semantics=("parallel",)),
        cost_estimate=cost,
    )(x_t, w1, b1, w2, b2)

    return out_t[:, :N]


def mce_ff_forward(x, w1, b1, w2, b2, *, tile_n=16384):
    """PyTorch-layout forward: x (N, 2) -> (N, 2) f32.

    The two transposes here are wrapper-side relayout passes; callers that can
    hold activations feature-major should call mce_ff_forward_tn directly.
    """
    N, in_f = x.shape
    assert in_f == 2
    return mce_ff_forward_tn(x.T, w1, b1, w2, b2, tile_n=tile_n).T


def reference_forward(x, w1, b1, w2, b2):
    h = jax.nn.sigmoid(
        jnp.dot(x, w1.T, precision=jax.lax.Precision.HIGHEST) + b1[:, 0])
    return jnp.dot(h, w2.T, precision=jax.lax.Precision.HIGHEST) + b2[:, 0]


if __name__ == "__main__":
    key = jax.random.PRNGKey(0)
    k_hidden = 32            # MCE_FF(k=32)
    in_features, out_features = 2, 2

    kx, k1, k2, k3, k4, kx2 = jax.random.split(key, 6)

    # Parameters in PyTorch layouts: hidden weight (k,2), output weight (2,k).
    w1 = jax.random.normal(k1, (k_hidden, in_features), dtype=jnp.float32) * 0.5
    b1 = jax.random.normal(k2, (k_hidden, 1), dtype=jnp.float32) * 0.1
    w2 = jax.random.normal(k3, (out_features, k_hidden), dtype=jnp.float32) * 0.5
    b2 = jax.random.normal(k4, (out_features, 1), dtype=jnp.float32) * 0.1

    # Small primary test (batch=8 -> one 128-lane tile, single grid step).
    x_small = jax.random.normal(kx, (8, in_features), dtype=jnp.float32)
    out_small = jax.block_until_ready(mce_ff_forward(x_small, w1, b1, w2, b2))
    ref_small = reference_forward(x_small, w1, b1, w2, b2)
    assert out_small.shape == (8, out_features)
    assert jnp.allclose(out_small, ref_small, atol=1e-4, rtol=1e-5), "mismatch (small)"

    # Secondary test exercising >=2 grid steps + remainder padding
    # (N=1200 -> tile_n=640, 2 grid steps).
    x_big = jax.random.normal(kx2, (1200, in_features), dtype=jnp.float32)
    out_big = jax.block_until_ready(mce_ff_forward(x_big, w1, b1, w2, b2))
    ref_big = reference_forward(x_big, w1, b1, w2, b2)
    assert out_big.shape == (1200, out_features)
    assert jnp.allclose(out_big, ref_big, atol=1e-4, rtol=1e-5), "mismatch (big)"

    print("KERNEL_OK")
</pallas_src>

<mosaic_0001>
module attributes {stable_mosaic.version = 11 : i64} {
  func.func @mce_ff_kernel(%arg0: i32, %arg1: memref<2x128xf32, #tpu.memory_space<vmem>>, %arg2: memref<32x2xf32, #tpu.memory_space<vmem>>, %arg3: memref<32x1xf32, #tpu.memory_space<vmem>>, %arg4: memref<2x32xf32, #tpu.memory_space<vmem>>, %arg5: memref<2x1xf32, #tpu.memory_space<vmem>>, %arg6: memref<2x128xf32, #tpu.memory_space<vmem>>) attributes {dimension_semantics = [#tpu.dimension_semantics<parallel>], iteration_bounds = array<i64: 1>, scalar_prefetch = 0 : i64, scratch_operands = 0 : i64, tpu.core_type = #tpu.core_type<tc>, window_params = [{transform_indices = @transform_0, window_bounds = array<i64: 2, 128>}, {pipeline_mode = #tpu.pipeline_mode<synchronous>, transform_indices = @transform_1, window_bounds = array<i64: 32, 2>}, {pipeline_mode = #tpu.pipeline_mode<synchronous>, transform_indices = @transform_2, window_bounds = array<i64: 32, 1>}, {pipeline_mode = #tpu.pipeline_mode<synchronous>, transform_indices = @transform_3, window_bounds = array<i64: 2, 32>}, {pipeline_mode = #tpu.pipeline_mode<synchronous>, transform_indices = @transform_4, window_bounds = array<i64: 2, 1>}, {transform_indices = @transform_5, window_bounds = array<i64: 2, 128>}]} {
    %c0 = arith.constant 0 : index
    %c0_0 = arith.constant 0 : index
    %0 = vector.load %arg1[%c0, %c0_0] : memref<2x128xf32, #tpu.memory_space<vmem>>, vector<2x128xf32>
    %c0_1 = arith.constant 0 : index
    %c0_2 = arith.constant 0 : index
    %1 = vector.load %arg2[%c0_1, %c0_2] : memref<32x2xf32, #tpu.memory_space<vmem>>, vector<32x2xf32>
    %cst = arith.constant dense<0.000000e+00> : vector<32x128xf32>
    %2 = tpu.matmul %1, %0, %cst {dimension_numbers = #tpu.dot_dimension_numbers<[1], [0], [0], [1], [0, 0, 1, 1], [], []>} : vector<32x2xf32>, vector<2x128xf32>, vector<32x128xf32> -> vector<32x128xf32>
    %c0_3 = arith.constant 0 : index
    %c0_4 = arith.constant 0 : index
    %3 = vector.load %arg3[%c0_3, %c0_4] : memref<32x1xf32, #tpu.memory_space<vmem>>, vector<32x1xf32>
    %4 = vector.broadcast %3 : vector<32x1xf32> to vector<32x128xf32>
    %5 = arith.addf %2, %4 : vector<32x128xf32>
    %6 = arith.negf %5 : vector<32x128xf32>
    %7 = math.exp %6 : vector<32x128xf32>
    %cst_5 = arith.constant 1.000000e+00 : f32
    %8 = vector.broadcast %cst_5 : f32 to vector<32x128xf32>
    %9 = arith.addf %8, %7 : vector<32x128xf32>
    %10 = arith.divf %8, %9 : vector<32x128xf32>
    %c0_6 = arith.constant 0 : index
    %c0_7 = arith.constant 0 : index
    %11 = vector.load %arg4[%c0_6, %c0_7] : memref<2x32xf32, #tpu.memory_space<vmem>>, vector<2x32xf32>
    %cst_8 = arith.constant dense<0.000000e+00> : vector<2x128xf32>
    %12 = tpu.matmul %11, %10, %cst_8 {dimension_numbers = #tpu.dot_dimension_numbers<[1], [0], [0], [1], [0, 0, 1, 1], [], []>} : vector<2x32xf32>, vector<32x128xf32>, vector<2x128xf32> -> vector<2x128xf32>
    %c0_9 = arith.constant 0 : index
    %c0_10 = arith.constant 0 : index
    %13 = vector.load %arg5[%c0_9, %c0_10] : memref<2x1xf32, #tpu.memory_space<vmem>>, vector<2x1xf32>
    %14 = vector.broadcast %13 : vector<2x1xf32> to vector<2x128xf32>
    %15 = arith.addf %12, %14 : vector<2x128xf32>
    %c0_11 = arith.constant 0 : index
    %c0_12 = arith.constant 0 : index
    %16 = vector.load %arg6[%c0_11, %c0_12] : memref<2x128xf32, #tpu.memory_space<vmem>>, vector<2x128xf32>
    tpu.vector_store %arg6[%c0_11, %c0_12], %15 {strides = array<i32>} : memref<2x128xf32, #tpu.memory_space<vmem>>, vector<2x128xf32>,
    return
  }
  func.func @transform_0(%arg0: i32) -> (i32, i32) {
    %c0_i32 = arith.constant 0 : i32
    %c0_i32_0 = arith.constant 0 : i32
    return %c0_i32, %arg0 : i32, i32
  }
  func.func @transform_1(%arg0: i32) -> (i32, i32) {
    %c0_i32 = arith.constant 0 : i32
    %c0_i32_0 = arith.constant 0 : i32
    %c0_i32_1 = arith.constant 0 : i32
    return %c0_i32, %c0_i32_0 : i32, i32
  }
  func.func @transform_2(%arg0: i32) -> (i32, i32) {
    %c0_i32 = arith.constant 0 : i32
    %c0_i32_0 = arith.constant 0 : i32
    %c0_i32_1 = arith.constant 0 : i32
    return %c0_i32, %c0_i32_0 : i32, i32
  }
  func.func @transform_3(%arg0: i32) -> (i32, i32) {
    %c0_i32 = arith.constant 0 : i32
    %c0_i32_0 = arith.constant 0 : i32
    %c0_i32_1 = arith.constant 0 : i32
    return %c0_i32, %c0_i32_0 : i32, i32
  }
  func.func @transform_4(%arg0: i32) -> (i32, i32) {
    %c0_i32 = arith.constant 0 : i32
    %c0_i32_0 = arith.constant 0 : i32
    %c0_i32_1 = arith.constant 0 : i32
    return %c0_i32, %c0_i32_0 : i32, i32
  }
  func.func @transform_5(%arg0: i32) -> (i32, i32) {
    %c0_i32 = arith.constant 0 : i32
    %c0_i32_0 = arith.constant 0 : i32
    return %c0_i32, %arg0 : i32, i32
  }
}

</mosaic_0001>

<bundles_post_ra>
// kernel: tpu_custom_call.1
= control target key start
LH: loop header
LB: loop body
LE: loop exit
PB: predicated region body
PF: predicated region fallthrough
CT: control target
= control target key end

     0   :  { %vm63_vm0 = vcmask 1041408   ;;  %vm50_vm1 = vcmask 15360   ;;  %v364_v5 = vmov 0   ;;  %s448_s0 = inlined_call_operand.vmem [shape: f32[2,128], index: 0, kind: input, shape index: {}]   ;;  %s449_s1 = inlined_call_operand.vmem [shape: f32[32,2], index: 1, kind: input, shape index: {}]   ;;  %s450_s2 = inlined_call_operand.vmem [shape: f32[32,1], index: 2, kind: input, shape index: {}]   ;;  %s451_s3 = inlined_call_operand.vmem [shape: f32[2,32], index: 3, kind: input, shape index: {}]   ;;  %s452_s4 = inlined_call_operand.vmem [shape: f32[2,1], index: 4, kind: input, shape index: {}]   ;;  %s453_s5 = inlined_call_operand.hbm [shape: f32[2,128], index: 5, kind: output, shape index: {}]  }
   0x1   :  { %v21_v0 = vld [vmem:[%s448_s0] sm:$0x3]  ;;  %v23_v2 = vld [vmem:[%s449_s1 + $0x8] sm:$0xff]  ;;  %v24_v3 = vld [vmem:[%s449_s1 + $0x10] sm:$0xff]  ;;  %322 = vset.pattern.permute.xlu0 %v364_v5 }
   0x2   :  { %v22_v1 = vld [vmem:[%s449_s1] sm:$0xff]  ;;  %292 = vmatprep.subr.msk.mxu0 %vm63_vm0, %v21_v0  ;;  %v28_v6 = vld [vmem:[%s450_s2 + $0x10] sm:$0xff] }
   0x3   :  { %294 = vmatprep.mubr.msk.f32.mxu0 %vm50_vm1, %v22_v1  ;;  %v26_v4 = vld [vmem:[%s450_s2] sm:$0xff]  ;;  %293 = vmatpush3.msk.msra.mxu0 %vm63_vm0, %v21_v0 }
   0x4   :  { %295 = vmatmul.mubr.msk.f32.vlgmr.msra.gmra.mrb[0].mxu0 %vm50_vm1, %v23_v2  ;;  %32 = vperm.xlu0 %322, %v26_v4  }
   0x5   :  { %10 = vsyncpa [#allocation3], 0  ;;  %297 = vmatprep.mubr.msk.f32.mxu0 %vm50_vm1, %v24_v3  ;;  %v25_v7 = vld [vmem:[%s449_s1 + $0x18] sm:$0xff]  ;;  %v27_v8 = vld [vmem:[%s450_s2 + $0x8] sm:$0xff]  ;;  %323 = vset.pattern.permute.xlu1 %v364_v5  ;;  %v365_v11 = vmov 0.0|0.0   ;;  %vm366_vm2 = vmmov 0  }
   0x6   :  { %42 = vperm.xlu1 %323, %v28_v6   ;;  %v29_v9 = vld [vmem:[%s450_s2 + $0x18] sm:$0xff]  ;;  %v177_v10 = vld [vmem:[%s452_s4] sm:$0x3]  ;;  %311 = vmatprep.subr.bf16.mxu1 %v365_v11  ;;  %v367_v12 = vmov 0.0   ;;  %vm183_vm3 = vcmask 261120   ;;  %s368_s4 = smov [#allocation2]  }
   0x7   :  { %308 = vmatprep.mubr.msk.f32.mxu1 %vm366_vm2, %v367_v12  ;;  %v176_v43 = vld [vmem:[%s451_s3] sm:$0x3]  ;;  %s264_s12 = sshll.u32 %s368_s4, 4  ;;  %s265_s12 = int_to_ptr.vmem [resolvable:$true] %s264_s12 }
   0x8   :  { %298 = vmatmul.mubr.msk.f32.gmra.mrb[2].mxu0 %vm50_vm1, %v25_v7  ;;  %37 = vperm.xlu0 %322, %v27_v8   ;;  %s340_s13 = scalar_lea.vmem %s265_s12, 32  ;;  %p345_p1 = scmp.lt.s32.totalorder %s265_s12, %s265_s12 }
   0x9   :  { %p341_p0 = scmp.ne.s32.totalorder %s265_s12, %s340_s13  ;;  %p346_p2 = scmp.lt.s32.totalorder %s340_s13, %s340_s13 }
   0xa   :  { %47 = vperm.xlu1 %323, %v29_v9  }
   0xb   :  { %p347_p3 = por %p346_p2, %p345_p1 }
   0xc   :  { %180 = vperm.xlu0 %322, %v177_v10  }
   0xd   :  { %p348_p4 = pnand %p347_p3, %p341_p0 }
  0x83   :  { %v33_v13 = vpop.permute.xlu0 %32 }
  0x85   :  { %v43_v14 = vpop.permute.xlu1 %42 }
  0x87   :  { %v38_v15 = vpop.permute.xlu0 %37 }
  0x89   :  { %v48_v21 = vpop.permute.xlu1 %47 }
  0x8b   :  { %v181_v44 = vpop.permute.xlu0 %180 }
  0xd7   :  { %v296_v16 = vpop.f32.mrb[0].mxu0 }
  0xd8   :  { %v139_v17 = vadd.f32 %v296_v16, %v38_v15  ;;  %v133_v18 = vpop.f32.mrb[1].mxu0 }
  0xd9   :  { %v134_v19 = vadd.f32 %v133_v18, %v33_v13 }
  0xda   :  { %v278_v20 = vmul.f32 -1.442695, %v139_v17 }
  0xdb   :  { %v277_v22 = vmul.f32 -1.442695, %v134_v19  ;;  %v299_v23 = vpop.f32.mrb[2].mxu0 }
  0xdc   :  { %324 = vpow2.f32 %v278_v20  ;;  %v149_v24 = vadd.f32 %v299_v23, %v48_v21  ;;  %v143_v25 = vpop.f32.mrb[3].mxu0 }
  0xdd   :  { %326 = vpow2.f32 %v277_v22  ;;  %v144_v26 = vadd.f32 %v143_v25, %v43_v14 }
  0xde   :  { %v280_v27 = vmul.f32 -1.442695, %v149_v24 }
  0xdf   :  { %v279_v28 = vmul.f32 -1.442695, %v144_v26 }
  0xe0   :  { %328 = vpow2.f32 %v280_v27 }
  0xe1   :  { %330 = vpow2.f32 %v279_v28 }
  0xe6   :  { %v325_v29 = vpop.eup %324 }
  0xe7   :  { %v327_v30 = vpop.eup %326  ;;  %v165_v31 = vadd.f32 1.0, %v325_v29 }
  0xe8   :  { %v164_v32 = vadd.f32 1.0, %v327_v30 }
  0xe9   :  { %332 = vrcp.f32 %v165_v31 }
  0xea   :  { %v329_v33 = vpop.eup %328  ;;  %334 = vrcp.f32 %v164_v32 }
  0xeb   :  { %v331_v34 = vpop.eup %330  ;;  %v167_v35 = vadd.f32 1.0, %v329_v33 }
  0xec   :  { %v166_v36 = vadd.f32 1.0, %v331_v34 }
  0xed   :  { %336 = vrcp.f32 %v167_v35 }
  0xee   :  { %338 = vrcp.f32 %v166_v36 }
  0xf3   :  { %v333_v37 = vpop.eup %332 }
  0xf4   :  { %v335_v38 = vpop.eup %334 }
  0xf5   :  { %v312_v39 = vpack.c.bf16 %v333_v37, %v335_v38 }
  0xf7   :  { %v337_v40 = vpop.eup %336  ;;  %313 = vmatpush3.bf16.msra.mxu1 %v312_v39 }
  0xf8   :  { %v339_v41 = vpop.eup %338  ;;  %314 = vmatprep.subr.bf16.mxu1 %v365_v11 }
  0xf9   :  { %v315_v42 = vpack.c.bf16 %v337_v40, %v339_v41 }
  0xfb   :  { %316 = vmatpush3.bf16.msra.mxu1 %v315_v42 }
  0xfe   :  { %309 = vmatmul.mubr.msk.f32.vlgmr.msra.gmra.mrb[0].mxu1 %vm183_vm3, %v176_v43 }
 0x1d1   :  { %v253_v45 = vpop.f32.mrb[0].mxu1 }
 0x1d2   :  { %v254_v46 = vadd.f32 %v253_v45, %v181_v44  ;;  %v310_v47 = vpop.f32.mrb[1].mxu1 }
 0x1d4   :  { %257 = vst [vmem:[#allocation2] sm:$0x3] %v254_v46 }
 0x1d5   :  { %351 = shalt.err (!%p348_p4)
}
 0x1d6   :  { %s352_s3 = scalar_lea.hbm %s453_s5, 32 }
 0x1d7   :  { %p353_p5 = scmp.ne.s32.totalorder %s453_s5, %s352_s3  ;;  %p356_p6 = scmp.lt.u32.totalorder %s352_s3, %s453_s5 }
 0x1d9   :  { %p358_p7 = pnand %p356_p6, %p353_p5 }
 0x1db   :  { %361 = shalt.err (!%p358_p7)
}
 0x1dc   :  { %267 = dma.vmem_to_hbm [thread:$0]  %s265_s12, 32, %s453_s5, [#allocation3]  }
 0x1dd   :  { %362 = dma.done.wait [#allocation3], 32  }
 0x1de   :  { %363 = vsyncadd [#allocation3], 4294967264 }
 0x1df   :  { %271 = vsyncpa [#allocation3], 1 }

</bundles_post_ra>
